<compile_context>
chip_gen: v6e
topology: v6e:2x2x1
jax: 0.10.0
libtpu: 0.0.40
codegen_flags: <defaults>
</compile_context>

<pallas_src>
import functools
import math

import jax
import jax.numpy as jnp
from jax.experimental import pallas as pl
from jax.experimental.pallas import tpu as pltpu

LANE = 128
# Budget for the double-buffered x/out tiles (safe on all of v5e/v6e/v7x once
# the scoped VMEM limit is raised via CompilerParams below).
_TILE_VMEM_BUDGET = 32 * 1024 * 1024
_MAX_BLOCK_ROWS = 1024


def layernorm_kernel(x_ref, w_ref, b_ref, o_ref, *, eps, true_h):
    """Row-wise LayerNorm over the (possibly lane-padded) last dim.

    One fused reduction pass: sum(x) and sum(x*x) over the padded hidden dim
    (zero padding contributes nothing), divided by the *true* hidden size.
    All statistics in f32.
    """
    x = x_ref[...].astype(jnp.float32)                  # (tm, Hp)
    inv_h = jnp.float32(1.0 / true_h)
    sum_x = jnp.sum(x, axis=-1, keepdims=True)          # (tm, 1)
    sum_x2 = jnp.sum(x * x, axis=-1, keepdims=True)     # (tm, 1)
    mean = sum_x * inv_h
    var = jnp.maximum(sum_x2 * inv_h - mean * mean, 0.0)  # biased variance
    inv = jax.lax.rsqrt(var + eps)
    y = (x - mean) * inv                                 # (tm, Hp), f32

    if o_ref.dtype == jnp.bfloat16:
        # bf16 epilogue on chips with bf16 VALU: halves vreg pressure of the
        # largest live tensor. Stats stayed in f32 above.
        y16 = y.astype(jnp.bfloat16)
        w = w_ref[...].astype(jnp.bfloat16)
        b = b_ref[...].astype(jnp.bfloat16)
        o_ref[...] = w * y16 + b
    else:
        w = w_ref[...].astype(jnp.float32)
        b = b_ref[...].astype(jnp.float32)
        o_ref[...] = (w * y + b).astype(o_ref.dtype)


def layer_norm(x, weight, bias, eps=1e-12):
    """x: (..., H); weight, bias: (H,). Returns same shape/dtype as x."""
    orig_shape = x.shape
    H = orig_shape[-1]
    rows = math.prod(orig_shape[:-1]) if len(orig_shape) > 1 else 1

    dtype = x.dtype
    bytes_el = jnp.dtype(dtype).itemsize

    # Lane-dense hidden dim: pad to a multiple of 128 (zero padding is
    # stats-neutral because the kernel divides sums by the true H).
    Hp = ((H + LANE - 1) // LANE) * LANE

    # Row alignment for clean sublane packing of the I/O dtype.
    if bytes_el == 1:
        row_align = 32
    elif bytes_el == 2:
        row_align = 16
    else:
        row_align = 8

    # Largest row tile whose double-buffered input + output tiles fit the
    # VMEM budget, capped at _MAX_BLOCK_ROWS and the (aligned) row count.
    per_row_bytes = 4 * Hp * bytes_el            # 2x in + 2x out buffers
    tm = _TILE_VMEM_BUDGET // per_row_bytes
    tm = max(row_align, (tm // row_align) * row_align)
    tm = min(tm, _MAX_BLOCK_ROWS)
    rows_aligned = ((rows + row_align - 1) // row_align) * row_align
    tm = min(tm, rows_aligned)

    grid_m = pl.cdiv(rows, tm)
    rows_p = grid_m * tm

    x2 = x.reshape(rows, H)
    if rows_p != rows or Hp != H:
        x2 = jnp.pad(x2, ((0, rows_p - rows), (0, Hp - H)))
    w2 = weight.reshape(1, H)
    b2 = bias.reshape(1, H)
    if Hp != H:
        w2 = jnp.pad(w2, ((0, 0), (0, Hp - H)))
        b2 = jnp.pad(b2, ((0, 0), (0, Hp - H)))

    # Raise the scoped VMEM limit above the v5e (16 MiB) / v6e, v7x (32 MiB)
    # defaults; stay well below v7x's 64 MiB physical VMEM.
    param_bytes = jnp.dtype(weight.dtype).itemsize
    needed = 4 * tm * Hp * bytes_el + 4 * Hp * param_bytes + (2 << 20)
    vmem_limit = int(min(max(needed, 16 << 20), 48 << 20))

    kernel = functools.partial(layernorm_kernel, eps=float(eps), true_h=int(H))

    out = pl.pallas_call(
        kernel,
        out_shape=jax.ShapeDtypeStruct((rows_p, Hp), dtype),
        grid_spec=pltpu.PrefetchScalarGridSpec(
            num_scalar_prefetch=0,
            grid=(grid_m,),
            in_specs=[
                pl.BlockSpec((tm, Hp), lambda i: (i, 0)),   # x tile
                pl.BlockSpec((1, Hp), lambda i: (0, 0)),    # weight (bcast)
                pl.BlockSpec((1, Hp), lambda i: (0, 0)),    # bias   (bcast)
            ],
            out_specs=pl.BlockSpec((tm, Hp), lambda i: (i, 0)),
        ),
        compiler_params=pltpu.CompilerParams(
            dimension_semantics=("parallel",),     # shards rows over v7x's 2 TCs
            vmem_limit_bytes=vmem_limit,
        ),
    )(x2, w2, b2)

    out = out[:rows, :H]
    return out.reshape(orig_shape)


def layer_norm_ref(x, weight, bias, eps=1e-12):
    u = jnp.mean(x, axis=-1, keepdims=True)
    s = jnp.mean((x - u) ** 2, axis=-1, keepdims=True)
    xn = (x - u) / jnp.sqrt(s + eps)
    return weight * xn + bias


if __name__ == "__main__":
    key = jax.random.PRNGKey(0)

    # Primary check: shapes implied by the module (batch, seq, hidden).
    batch, seq, hidden = 2, 8, 32
    kx, kw, kb, kx2, kw2, kb2 = jax.random.split(key, 6)

    x = jax.random.normal(kx, (batch, seq, hidden), dtype=jnp.float32)
    weight = jnp.ones((hidden,), jnp.float32) + 0.01 * jax.random.normal(kw, (hidden,))
    bias = jnp.zeros((hidden,), jnp.float32) + 0.01 * jax.random.normal(kb, (hidden,))

    out = layer_norm(x, weight, bias, eps=1e-12)
    out = jax.block_until_ready(out)
    ref = layer_norm_ref(x, weight, bias, eps=1e-12)
    assert out.shape == x.shape and out.dtype == x.dtype
    assert jnp.allclose(out, ref, atol=1e-5, rtol=1e-5), "mismatch vs reference"

    # Secondary check: row count not a multiple of the tile and hidden not a
    # multiple of 128 (exercises the padding / cdiv path).
    b2_, s2_, h2_ = 3, 5, 96
    x_b = jax.random.normal(kx2, (b2_, s2_, h2_), dtype=jnp.float32)
    w_b = jnp.ones((h2_,), jnp.float32) + 0.01 * jax.random.normal(kw2, (h2_,))
    bi_b = jnp.zeros((h2_,), jnp.float32) + 0.01 * jax.random.normal(kb2, (h2_,))
    out_b = jax.block_until_ready(layer_norm(x_b, w_b, bi_b, eps=1e-12))
    ref_b = layer_norm_ref(x_b, w_b, bi_b, eps=1e-12)
    assert out_b.shape == x_b.shape and out_b.dtype == x_b.dtype
    assert jnp.allclose(out_b, ref_b, atol=1e-5, rtol=1e-5), "mismatch (padded case)"

    print("KERNEL_OK")
</pallas_src>

<mosaic_0001>
module attributes {stable_mosaic.version = 11 : i64} {
  func.func @layernorm_kernel(%arg0: i32, %arg1: memref<16x128xf32, #tpu.memory_space<vmem>>, %arg2: memref<1x128xf32, #tpu.memory_space<vmem>>, %arg3: memref<1x128xf32, #tpu.memory_space<vmem>>, %arg4: memref<16x128xf32, #tpu.memory_space<vmem>>) attributes {dimension_semantics = [#tpu.dimension_semantics<parallel>], iteration_bounds = array<i64: 1>, scalar_prefetch = 0 : i64, scratch_operands = 0 : i64, tpu.core_type = #tpu.core_type<tc>, window_params = [{transform_indices = @transform_0, window_bounds = array<i64: 16, 128>}, {pipeline_mode = #tpu.pipeline_mode<synchronous>, transform_indices = @transform_1, window_bounds = array<i64: 1, 128>}, {pipeline_mode = #tpu.pipeline_mode<synchronous>, transform_indices = @transform_2, window_bounds = array<i64: 1, 128>}, {transform_indices = @transform_3, window_bounds = array<i64: 16, 128>}]} {
    %c0 = arith.constant 0 : index
    %c0_0 = arith.constant 0 : index
    %0 = vector.load %arg1[%c0, %c0_0] : memref<16x128xf32, #tpu.memory_space<vmem>>, vector<16x128xf32>
    %cst = arith.constant dense<0.000000e+00> : vector<16xf32>
    %1 = vector.multi_reduction <add>, %0, %cst [1] : vector<16x128xf32> to vector<16xf32>
    %2 = vector.shape_cast %1 : vector<16xf32> to vector<16x1xf32>
    %3 = arith.mulf %0, %0 : vector<16x128xf32>
    %cst_1 = arith.constant dense<0.000000e+00> : vector<16xf32>
    %4 = vector.multi_reduction <add>, %3, %cst_1 [1] : vector<16x128xf32> to vector<16xf32>
    %5 = vector.shape_cast %4 : vector<16xf32> to vector<16x1xf32>
    %cst_2 = arith.constant 3.125000e-02 : f32
    %6 = vector.broadcast %cst_2 : f32 to vector<16x1xf32>
    %7 = arith.mulf %2, %6 : vector<16x1xf32>
    %cst_3 = arith.constant 3.125000e-02 : f32
    %8 = vector.broadcast %cst_3 : f32 to vector<16x1xf32>
    %9 = arith.mulf %5, %8 : vector<16x1xf32>
    %10 = arith.mulf %7, %7 : vector<16x1xf32>
    %11 = arith.subf %9, %10 : vector<16x1xf32>
    %cst_4 = arith.constant 0.000000e+00 : f32
    %12 = vector.broadcast %cst_4 : f32 to vector<16x1xf32>
    %13 = arith.maximumf %11, %12 : vector<16x1xf32>
    %cst_5 = arith.constant 9.99999996E-13 : f32
    %14 = vector.broadcast %cst_5 : f32 to vector<16x1xf32>
    %15 = arith.addf %13, %14 : vector<16x1xf32>
    %16 = math.rsqrt %15 : vector<16x1xf32>
    %17 = vector.broadcast %7 : vector<16x1xf32> to vector<16x128xf32>
    %18 = arith.subf %0, %17 : vector<16x128xf32>
    %19 = vector.broadcast %16 : vector<16x1xf32> to vector<16x128xf32>
    %20 = arith.mulf %18, %19 : vector<16x128xf32>
    %c0_6 = arith.constant 0 : index
    %c0_7 = arith.constant 0 : index
    %21 = vector.load %arg2[%c0_6, %c0_7] : memref<1x128xf32, #tpu.memory_space<vmem>>, vector<1x128xf32>
    %c0_8 = arith.constant 0 : index
    %c0_9 = arith.constant 0 : index
    %22 = vector.load %arg3[%c0_8, %c0_9] : memref<1x128xf32, #tpu.memory_space<vmem>>, vector<1x128xf32>
    %23 = vector.broadcast %21 : vector<1x128xf32> to vector<16x128xf32>
    %24 = arith.mulf %23, %20 : vector<16x128xf32>
    %25 = vector.broadcast %22 : vector<1x128xf32> to vector<16x128xf32>
    %26 = arith.addf %24, %25 : vector<16x128xf32>
    %c0_10 = arith.constant 0 : index
    %c0_11 = arith.constant 0 : index
    %27 = vector.load %arg4[%c0_10, %c0_11] : memref<16x128xf32, #tpu.memory_space<vmem>>, vector<16x128xf32>
    tpu.vector_store %arg4[%c0_10, %c0_11], %26 {strides = array<i32>} : memref<16x128xf32, #tpu.memory_space<vmem>>, vector<16x128xf32>,
    return
  }
  func.func @transform_0(%arg0: i32) -> (i32, i32) {
    %c0_i32 = arith.constant 0 : i32
    %c0_i32_0 = arith.constant 0 : i32
    return %arg0, %c0_i32 : i32, i32
  }
  func.func @transform_1(%arg0: i32) -> (i32, i32) {
    %c0_i32 = arith.constant 0 : i32
    %c0_i32_0 = arith.constant 0 : i32
    %c0_i32_1 = arith.constant 0 : i32
    return %c0_i32, %c0_i32_0 : i32, i32
  }
  func.func @transform_2(%arg0: i32) -> (i32, i32) {
    %c0_i32 = arith.constant 0 : i32
    %c0_i32_0 = arith.constant 0 : i32
    %c0_i32_1 = arith.constant 0 : i32
    return %c0_i32, %c0_i32_0 : i32, i32
  }
  func.func @transform_3(%arg0: i32) -> (i32, i32) {
    %c0_i32 = arith.constant 0 : i32
    %c0_i32_0 = arith.constant 0 : i32
    return %arg0, %c0_i32 : i32, i32
  }
}

</mosaic_0001>

<bundles_post_ra>
// kernel: tpu_custom_call.1
= control target key start
LH: loop header
LB: loop body
LE: loop exit
PB: predicated region body
PF: predicated region fallthrough
CT: control target
= control target key end

     0   :  { %8 = vsyncpa [#allocation3], 0  ;;  %s192_s0 = inlined_call_operand.hbm [shape: f32[16,128], index: 0, kind: input, shape index: {}]   ;;  %s193_s1 = inlined_call_operand.vmem [shape: f32[1,128], index: 1, kind: input, shape index: {}]   ;;  %s194_s2 = inlined_call_operand.vmem [shape: f32[1,128], index: 2, kind: input, shape index: {}]   ;;  %s195_s3 = inlined_call_operand.hbm [shape: f32[16,128], index: 3, kind: output, shape index: {}]  }
   0x1   :  { %9 = vsyncpa [#allocation4], 0  ;;  %s150_s12 = smov [#allocation2]  }
   0x2   :  { %s15_s13 = sshll.u32 %s150_s12, 4  ;;  %s16_s13 = int_to_ptr.vmem [resolvable:$true] %s15_s13 }
   0x3   :  { %s114_s14 = scalar_lea.vmem %s16_s13, 256  ;;  %p119_p1 = scmp.lt.s32.totalorder %s16_s13, %s16_s13 }
   0x4   :  { %p115_p0 = scmp.ne.s32.totalorder %s16_s13, %s114_s14  ;;  %p120_p2 = scmp.lt.s32.totalorder %s114_s14, %s114_s14 }
   0x6   :  { %p121_p3 = por %p120_p2, %p119_p1 }
   0x8   :  { %p122_p4 = pnand %p121_p3, %p115_p0 }
   0xa   :  { %125 = shalt.err (!%p122_p4)
}
   0xb   :  { %s151_s15 = smov 128   ;;  %s152_s16 = smov 8  }
   0xc   :  { %21 = dma.hbm_to_vmem [thread:$0]  %s192_s0, 256, %s16_s13, [#allocation3], %s151_s15, %s151_s15, %s152_s16  }
   0xd   :  { %146 = dma.done.wait [#allocation3], 256  }
   0xe   :  { %147 = vsyncadd [#allocation3], 4294967040  ;;  %v29_v0 = vld [vmem:[#allocation2] sm:$0xff]  ;;  %v30_v1 = vld [vmem:[#allocation2 + $0x8] sm:$0xff]  ;;  %s153_s22 = smov [#allocation5]  }
   0xf   :  { %31 = vadd.xlane.f32.xlu0 %v29_v0  ;;  %v35_v2 = vmul.f32 %v29_v0, %v29_v0  ;;  %v36_v3 = vmul.f32 %v30_v1, %v30_v1  ;;  %v96_v22 = vld [vmem:[%s193_s1] ss:$0 sm:$0xff]  ;;  %s84_s23 = sshll.u32 %s153_s22, 4  ;;  %s85_s23 = int_to_ptr.vmem [resolvable:$true] %s84_s23 }
  0x10   :  { %v97_v24 = vld [vmem:[%s194_s2] ss:$0 sm:$0xff]  ;;  %s126_s24 = scalar_lea.vmem %s85_s23, 256  ;;  %p131_p6 = scmp.lt.s32.totalorder %s85_s23, %s85_s23 }
  0x11   :  { %37 = vadd.xlane.f32.xlu1 %v35_v2  ;;  %p127_p5 = scmp.ne.s32.totalorder %s85_s23, %s126_s24  ;;  %p132_p7 = scmp.lt.s32.totalorder %s126_s24, %s126_s24 }
  0x13   :  { %33 = vadd.xlane.f32.xlu0 %v30_v1  ;;  %p133_p8 = por %p132_p7, %p131_p6 }
  0x15   :  { %39 = vadd.xlane.f32.xlu1 %v36_v3  ;;  %p134_p9 = pnand %p133_p8, %p127_p5 }
  0x98   :  { %v32_v4 = vpop.xlane.xlu0 %31 }
  0x99   :  { %v41_v5 = vmul.f32 0.03125, %v32_v4 }
  0x9a   :  { %v38_v6 = vpop.xlane.xlu1 %37 }
  0x9b   :  { %v45_v7 = vmul.f32 %v41_v5, %v41_v5  ;;  %v43_v8 = vmul.f32 0.03125, %v38_v6  ;;  %v55_v20 = vsub.f32 %v29_v0, %v41_v5 }
  0x9c   :  { %v34_v9 = vpop.xlane.xlu0 %33 }
  0x9d   :  { %v47_v10 = vsub.f32 %v43_v8, %v45_v7  ;;  %v42_v11 = vmul.f32 0.03125, %v34_v9 }
  0x9e   :  { %v40_v12 = vpop.xlane.xlu1 %39 }
  0x9f   :  { %v49_v13 = vmax.f32 %v47_v10, 0.0  ;;  %v46_v14 = vmul.f32 %v42_v11, %v42_v11  ;;  %v44_v15 = vmul.f32 0.03125, %v40_v12  ;;  %v56_v25 = vsub.f32 %v30_v1, %v42_v11 }
  0xa1   :  { %v51_v16 = vadd.f32 1e-12, %v49_v13  ;;  %v48_v17 = vsub.f32 %v44_v15, %v46_v14 }
  0xa3   :  { %102 = vrsqrt.f32 %v51_v16  ;;  %v50_v18 = vmax.f32 %v48_v17, 0.0 }
  0xa5   :  { %v52_v19 = vadd.f32 1e-12, %v50_v18 }
  0xa7   :  { %104 = vrsqrt.f32 %v52_v19 }
  0xb0   :  { %v103_v21 = vpop.eup %102 }
  0xb1   :  { %v57_v23 = vmul.f32 %v103_v21, %v55_v20 }
  0xb3   :  { %v67_v26 = vmul.f32 %v96_v22, %v57_v23 }
  0xb4   :  { %v105_v27 = vpop.eup %104 }
  0xb5   :  { %v58_v28 = vmul.f32 %v105_v27, %v56_v25  ;;  %v75_v29 = vadd.f32 %v97_v24, %v67_v26 }
  0xb7   :  { %v68_v30 = vmul.f32 %v96_v22, %v58_v28  ;;  %77 = vst [vmem:[#allocation5] sm:$0xff] %v75_v29 }
  0xb9   :  { %v76_v31 = vadd.f32 %v97_v24, %v68_v30 }
  0xbb   :  { %78 = vst [vmem:[#allocation5 + $0x8] sm:$0xff] %v76_v31 }
  0xbc   :  { %137 = shalt.err (!%p134_p9)
}
  0xbd   :  { %90 = dma.vmem_to_hbm [thread:$0]  %s85_s23, 256, %s195_s3, [#allocation4], %s151_s15, %s151_s15, %s152_s16  }
  0xbe   :  { %148 = dma.done.wait [#allocation4], 256  }
  0xbf   :  { %149 = vsyncadd [#allocation4], 4294967040 }
  0xc0   :  { %94 = vsyncpa [#allocation3], 1 }
  0xc1   :  { %95 = vsyncpa [#allocation4], 1 }

</bundles_post_ra>
